<compile_context>
chip_gen: v7x
topology: tpu7x:2x2x1
jax: 0.10.0
libtpu: 0.0.40
codegen_flags: <defaults>
</compile_context>

<pallas_src>
import jax
import jax.numpy as jnp
from jax.experimental import pallas as pl
from jax.experimental.pallas import tpu as pltpu


_MAX_DMA_CHUNKS = 4                  # 2-4 concurrent DMAs is enough to saturate HBM
_CHUNK_BYTES_THRESHOLD = 4 << 20     # only split the copy when moving >= 4 MiB


def _row_splits(n_rows: int, nbytes: int):
    """Static (start, size) row ranges for the chunked DMA memcpy."""
    if nbytes < _CHUNK_BYTES_THRESHOLD or n_rows < _MAX_DMA_CHUNKS:
        return ((0, n_rows),)
    base, rem = divmod(n_rows, _MAX_DMA_CHUNKS)
    splits, start = [], 0
    for c in range(_MAX_DMA_CHUNKS):
        size = base + (1 if c < rem else 0)
        splits.append((start, size))
        start += size
    return tuple(splits)


def _make_memcpy_kernel(row_splits):
    """Grid-free whole-array HBM->HBM memcpy via concurrent async DMAs."""

    def kernel(x_hbm, o_hbm, sems):
        copies = []
        for c, (start, size) in enumerate(row_splits):
            cp = pltpu.make_async_copy(
                x_hbm.at[pl.ds(start, size)],
                o_hbm.at[pl.ds(start, size)],
                sems.at[c],
            )
            cp.start()
            copies.append(cp)
        for cp in copies:
            cp.wait()

    return kernel


def _dma_memcpy(x: jax.Array) -> jax.Array:
    """Bit-exact copy of `x` through a single grid-free Pallas DMA kernel."""
    n_rows = x.shape[0]
    nbytes = x.size * x.dtype.itemsize
    splits = _row_splits(n_rows, nbytes)
    return pl.pallas_call(
        _make_memcpy_kernel(splits),
        out_shape=jax.ShapeDtypeStruct(x.shape, x.dtype),
        in_specs=[pl.BlockSpec(memory_space=pl.ANY)],
        out_specs=pl.BlockSpec(memory_space=pl.ANY),
        scratch_shapes=[pltpu.SemaphoreType.DMA((len(splits),))],
        compiler_params=pltpu.CompilerParams(has_side_effects=True),
        cost_estimate=pl.CostEstimate(
            flops=0, transcendentals=0, bytes_accessed=2 * nbytes
        ),
    )(x)


@jax.jit
def cluster_embedding_forward(table: jax.Array) -> jax.Array:
    """Forward of ClusterEmbedding: embedding(arange(n)) == the table itself.

    Implemented as a grid-free HBM->HBM DMA memcpy of the (n, emb_dim) table:
    1 read + 1 write of the table, no wrapper pad/slice passes.
    """
    if table.size == 0:           # static shape check; avoids a zero-size DMA
        return table
    return _dma_memcpy(table)


# TODO(synk): a general scattered-index gather (non-arange inds) would need a
# separate path (per-row pltpu.make_async_copy gathers from the pl.ANY table);
# the module only ever gathers arange(n), so it is intentionally not built.


class ClusterEmbeddingJAX:
    """JAX/Pallas equivalent of the PyTorch ClusterEmbedding module."""

    def __init__(self, y_target: jax.Array, key: jax.Array):
        self.n_examples = y_target.shape[0]
        self.y_target = y_target
        # The PyTorch module's self.inds is always arange(n_examples).
        self.inds = jnp.arange(self.n_examples, dtype=jnp.int32)
        # TODO(synk): nn.Embedding init uses torch's RNG; here weights are drawn
        # with jax.random (same N(0,1) distribution, different values).
        self.embedding_weight = jax.random.normal(
            key, (self.n_examples, 2), dtype=jnp.float32
        )

    def forward(self) -> jax.Array:
        # inds == arange(n_examples) -> identity gather -> DMA memcpy of table.
        return cluster_embedding_forward(self.embedding_weight)


if __name__ == "__main__":
    key = jax.random.PRNGKey(0)
    k_y, k_w, k_med, k_big = jax.random.split(key, 4)

    # Small case matching the module semantics (n_examples=8, emb_dim=2).
    n_examples = 8
    y_target = jax.random.randint(k_y, (n_examples,), 0, 3, dtype=jnp.int32)
    model = ClusterEmbeddingJAX(y_target, k_w)
    out = jax.block_until_ready(model.forward())
    assert out.shape == (n_examples, 2), out.shape
    assert jnp.array_equal(out, model.embedding_weight), "small-case mismatch"

    # Odd / non-(8,128)-aligned shape: no pad or slice needed on the DMA path.
    med_table = jax.random.normal(k_med, (2000, 2), dtype=jnp.float32)
    med_out = jax.block_until_ready(cluster_embedding_forward(med_table))
    assert jnp.array_equal(med_out, med_table), "medium-case mismatch"

    # Large table exercising the multi-chunk (4 concurrent DMAs) path.
    big_table = jax.random.normal(k_big, (600_000, 2), dtype=jnp.float32)
    big_out = jax.block_until_ready(cluster_embedding_forward(big_table))
    assert jnp.array_equal(big_out, big_table), "chunked-case mismatch"

    print("KERNEL_OK")
</pallas_src>

<mosaic_0001>
module attributes {stable_mosaic.version = 11 : i64} {
  func.func @kernel(%arg0: memref<8x2xf32, #tpu.memory_space<any>>, %arg1: memref<8x2xf32, #tpu.memory_space<any>>, %arg2: memref<1x!tpu.dma_semaphore, #tpu.memory_space<semaphore_mem>>) attributes {dimension_semantics = [], scalar_prefetch = 0 : i64, scratch_operands = 1 : i64, tpu.core_type = #tpu.core_type<tc>} {
    %c0_i32 = arith.constant 0 : i32
    %c0_i32_0 = arith.constant 0 : i32
    %c0_i32_1 = arith.constant 0 : i32
    %0 = tpu.memref_slice %arg0[%c0_i32_0, %c0_i32_1] : memref<8x2xf32, #tpu.memory_space<any>> -> memref<8x2xf32, #tpu.memory_space<any>>
    %c0_i32_2 = arith.constant 0 : i32
    %c0_i32_3 = arith.constant 0 : i32
    %1 = tpu.memref_slice %arg1[%c0_i32_2, %c0_i32_3] : memref<8x2xf32, #tpu.memory_space<any>> -> memref<8x2xf32, #tpu.memory_space<any>>
    %2 = tpu.memref_slice %arg2[%c0_i32] : memref<1x!tpu.dma_semaphore, #tpu.memory_space<semaphore_mem>> -> memref<1x!tpu.dma_semaphore, #tpu.memory_space<semaphore_mem>>
    %3 = tpu.memref_squeeze %2 : memref<1x!tpu.dma_semaphore, #tpu.memory_space<semaphore_mem>> -> memref<!tpu.dma_semaphore, #tpu.memory_space<semaphore_mem>>
    tpu.enqueue_dma source(%0 : memref<8x2xf32, #tpu.memory_space<any>>) target(%1 : memref<8x2xf32, #tpu.memory_space<any>>) target_semaphore(%3 : memref<!tpu.dma_semaphore, #tpu.memory_space<semaphore_mem>>)
    %c0_i32_4 = arith.constant 0 : i32
    %c0_i32_5 = arith.constant 0 : i32
    %c0_i32_6 = arith.constant 0 : i32
    %4 = tpu.memref_slice %arg0[%c0_i32_5, %c0_i32_6] : memref<8x2xf32, #tpu.memory_space<any>> -> memref<8x2xf32, #tpu.memory_space<any>>
    %c0_i32_7 = arith.constant 0 : i32
    %c0_i32_8 = arith.constant 0 : i32
    %5 = tpu.memref_slice %arg1[%c0_i32_7, %c0_i32_8] : memref<8x2xf32, #tpu.memory_space<any>> -> memref<8x2xf32, #tpu.memory_space<any>>
    %6 = tpu.memref_slice %arg2[%c0_i32_4] : memref<1x!tpu.dma_semaphore, #tpu.memory_space<semaphore_mem>> -> memref<1x!tpu.dma_semaphore, #tpu.memory_space<semaphore_mem>>
    %7 = tpu.memref_squeeze %6 : memref<1x!tpu.dma_semaphore, #tpu.memory_space<semaphore_mem>> -> memref<!tpu.dma_semaphore, #tpu.memory_space<semaphore_mem>>
    tpu.wait_dma2 semaphore(%7 : memref<!tpu.dma_semaphore, #tpu.memory_space<semaphore_mem>>) src(%4 : memref<8x2xf32, #tpu.memory_space<any>>) dst(%5 : memref<8x2xf32, #tpu.memory_space<any>>)
    return
  }
}

</mosaic_0001>

<bundles_post_ra>
// kernel: cluster_embedding_forward.1
= control target key start
LH: loop header
LB: loop body
LE: loop exit
PB: predicated region body
PF: predicated region fallthrough
CT: control target
= control target key end

     0   :  { %s84_s0 = inlined_call_operand.vmem [shape: f32[8,2], index: 0, kind: input, shape index: {}]   ;;  %s85_s1 = inlined_call_operand.vmem [shape: f32[8,2], index: 1, kind: output, shape index: {}]  }
   0x1   :  { %v38_v0 = vld [vmem:[%s84_s0] sm:$0xff] }
   0x2   :  { %39 = vst [vmem:[%s85_s1] sm:$0xff] %v38_v0 }
   0x3   :  { %47 = vsyncadd [#allocation2], 128 }
   0x4   :  { %66 = dma.done.wait [#allocation2], 128 }
   0x5   :  { %67 = vsyncadd [#allocation2], 4294967168 }
   0x6   :  { %51 = vsyncmov [#allocation2] }
   0x9   :  { %s52_s10 = vpop.sfrf %51 }
   0xa   :  { %p65_p0 = scmp.ne.s32.totalorder %s52_s10, 0 }
   0xc   :  { %56 = shalt.err (%p65_p0)  }

</bundles_post_ra>
